<compile_context>
chip_gen: v5e
topology: v5e:2x2
jax: 0.10.0
libtpu: 0.0.40
codegen_flags: <defaults>
</compile_context>

<pallas_src>
import functools

import jax
import jax.numpy as jnp
from jax.experimental import pallas as pl
from jax.experimental.pallas import tpu as pltpu


def _se_kernel(x_ref, w1t_ref, b1_ref, alpha_ref, w2t_ref, b2_ref, o_ref,
               *, inv_hw):
    # x_ref: (Bt, C, HW) block; last dim is the full spatial axis.
    x = x_ref[...]                                              # native dtype

    # Squeeze: global average pool. Accumulate the sum in f32 without
    # materializing an upcast copy of the whole tile.
    pooled = jnp.sum(x, axis=-1, dtype=jnp.float32) * inv_hw    # (Bt, C)

    # Excitation: fc1 -> PReLU -> fc2 -> sigmoid (weights pre-transposed).
    # These matmuls are <<1% of the work and fully hidden under the DMA.
    y1 = jnp.dot(pooled, w1t_ref[...],
                 preferred_element_type=jnp.float32) + b1_ref[...]   # (Bt, R)
    alpha = alpha_ref[0]                                        # shared PReLU alpha
    y1 = jnp.where(y1 > 0, y1, alpha * y1)
    y2 = jnp.dot(y1, w2t_ref[...],
                 preferred_element_type=jnp.float32) + b2_ref[...]   # (Bt, C)
    scale = jax.nn.sigmoid(y2)                                  # (Bt, C), f32

    # Scale: per-channel gate broadcast over spatial. Multiply in x's dtype so
    # the big tile is never upcast (halves vreg/store traffic for bf16 inputs;
    # bf16 results differ from an all-f32 reference by one rounding).
    o_ref[...] = (x * scale[:, :, None].astype(x.dtype)).astype(o_ref.dtype)


def se_layer(x, w1, b1, alpha, w2, b2):
    """x: (B, C, H, W). Returns (B, C, H, W). w1: (R, C), w2: (C, R)."""
    B, C, H, W = x.shape
    HW = H * W
    R = w1.shape[0]
    itemsize = jnp.dtype(x.dtype).itemsize

    # No spatial padding: the kernel block uses the full HW axis directly.
    x_flat = x.reshape(B, C, HW)

    # ---- Generation-aware VMEM budgeting --------------------------------
    try:
        vmem_cap = int(pltpu.get_tpu_info().vmem_capacity_bytes)
    except Exception:
        vmem_cap = 64 << 20                      # conservative (v7x-sized) default
    # Bigger tiles on 128 MiB-VMEM parts (v5e/v6e); stay lean on v7x (64 MiB).
    budget = (8 << 20) if vmem_cap >= (128 << 20) else (4 << 20)

    # Honest per-batch footprint: second-minor dim (C) pads to the sublane
    # multiple (8 for f32, 16 for bf16, 32 for int8); minor dim pads to 128.
    sublane = 32 // itemsize
    c_pad = -(-C // sublane) * sublane
    hw_pad = -(-HW // 128) * 128
    per_batch_bytes = c_pad * hw_pad * itemsize

    # Batch tile from the budget; Bt need not divide B (cdiv grid, ragged tail).
    bt = max(1, min(B, budget // per_batch_bytes))
    # Prefer >= 4 grid steps (pipeline overlap + both v7x TensorCores), else
    # >= 2, as long as the tile stays >= ~1 MiB; otherwise keep the budget tile.
    for min_steps in (4, 2):
        cap = -(-B // min_steps)
        if cap < bt and cap * per_batch_bytes >= (1 << 20):
            bt = cap
            break
    grid = (pl.cdiv(B, bt),)
    # TODO(synk): if a single batch's (C, HW) slab alone exceeds the budget,
    # split HW across a reduction grid axis (pooled accumulator via pl.when)
    # plus a second scale pass instead of one oversized tile; and for B == 1
    # on v7x add a parallel channel-group axis so both TensorCores are used.

    tile_bytes = bt * per_batch_bytes
    # Scoped-VMEM limit: room for double-buffered in+out tiles plus weights,
    # capped well below physical VMEM so the compiler keeps scratch headroom
    # (matters most on v7x's 64 MiB).
    vmem_limit = int(min(int(0.72 * vmem_cap), max(32 << 20, 6 * tile_bytes)))

    # Pre-transpose weights once in the wrapper (constant-folded by XLA).
    w1t = jnp.asarray(w1).T              # (C, R)
    w2t = jnp.asarray(w2).T              # (R, C)
    b1_2d = b1.reshape(1, R)
    b2_2d = b2.reshape(1, C)

    # Advisory cost: HBM-bandwidth bound (read x + write out, unpadded sizes).
    cost = pl.CostEstimate(
        flops=2 * B * C * HW + 4 * B * C * R,
        transcendentals=B * C,
        bytes_accessed=2 * B * C * HW * itemsize + (2 * C * R + R + C) * 4,
    )

    kernel = functools.partial(_se_kernel, inv_hw=1.0 / float(HW))

    out_flat = pl.pallas_call(
        kernel,
        out_shape=jax.ShapeDtypeStruct((B, C, HW), x.dtype),
        grid=grid,
        in_specs=[
            pl.BlockSpec((bt, C, HW), lambda b: (b, 0, 0)),       # x
            pl.BlockSpec((C, R), lambda b: (0, 0)),               # fc1 weight^T
            pl.BlockSpec((1, R), lambda b: (0, 0)),               # fc1 bias
            pl.BlockSpec(memory_space=pltpu.MemorySpace.SMEM),    # prelu alpha
            pl.BlockSpec((R, C), lambda b: (0, 0)),               # fc2 weight^T
            pl.BlockSpec((1, C), lambda b: (0, 0)),               # fc2 bias
        ],
        out_specs=pl.BlockSpec((bt, C, HW), lambda b: (b, 0, 0)),
        compiler_params=pltpu.CompilerParams(
            dimension_semantics=("parallel",),
            vmem_limit_bytes=vmem_limit,
        ),
        cost_estimate=cost,
    )(x_flat, w1t, b1_2d, alpha, w2t, b2_2d)

    return out_flat.reshape(B, C, H, W)


def se_layer_ref(x, w1, b1, alpha, w2, b2):
    """Pure-JAX reference matching the PyTorch module."""
    y = jnp.mean(x, axis=(2, 3))                   # (B, C)
    y = y @ w1.T + b1                              # (B, R)
    y = jnp.where(y > 0, y, alpha[0] * y)          # PReLU (shared alpha)
    y = y @ w2.T + b2                              # (B, C)
    y = jax.nn.sigmoid(y)
    return x * y[:, :, None, None]


if __name__ == "__main__":
    key = jax.random.PRNGKey(0)
    B, C, H, W = 2, 4, 16, 16
    reduction = 16  # module maps C -> reduction (fixed 16), not C // reduction

    k_x, k_w1, k_b1, k_w2, k_b2 = jax.random.split(key, 5)

    x = jax.random.normal(k_x, (B, C, H, W), dtype=jnp.float32)

    # PyTorch Linear default init: U(-1/sqrt(fan_in), 1/sqrt(fan_in)).
    lim1 = 1.0 / jnp.sqrt(C)
    w1 = jax.random.uniform(k_w1, (reduction, C), jnp.float32, -lim1, lim1)
    b1 = jax.random.uniform(k_b1, (reduction,), jnp.float32, -lim1, lim1)
    lim2 = 1.0 / jnp.sqrt(reduction)
    w2 = jax.random.uniform(k_w2, (C, reduction), jnp.float32, -lim2, lim2)
    b2 = jax.random.uniform(k_b2, (C,), jnp.float32, -lim2, lim2)
    alpha = jnp.array([0.25], dtype=jnp.float32)  # PReLU default init

    out = se_layer(x, w1, b1, alpha, w2, b2)
    out = jax.block_until_ready(out)

    ref = se_layer_ref(x, w1, b1, alpha, w2, b2)
    assert out.shape == (B, C, H, W)
    assert jnp.allclose(out, ref, atol=1e-5, rtol=1e-5), "mismatch vs reference"

    print("KERNEL_OK")
</pallas_src>

<mosaic_0001>
module attributes {stable_mosaic.version = 11 : i64} {
  func.func @_se_kernel(%arg0: i32, %arg1: memref<2x4x256xf32, #tpu.memory_space<vmem>>, %arg2: memref<4x16xf32, #tpu.memory_space<vmem>>, %arg3: memref<1x16xf32, #tpu.memory_space<vmem>>, %arg4: memref<1xf32, #tpu.memory_space<smem>>, %arg5: memref<16x4xf32, #tpu.memory_space<vmem>>, %arg6: memref<1x4xf32, #tpu.memory_space<vmem>>, %arg7: memref<2x4x256xf32, #tpu.memory_space<vmem>>) attributes {dimension_semantics = [#tpu.dimension_semantics<parallel>], iteration_bounds = array<i64: 1>, scalar_prefetch = 0 : i64, scratch_operands = 0 : i64, tpu.core_type = #tpu.core_type<tc>, window_params = [{transform_indices = @transform_0, window_bounds = array<i64: 2, 4, 256>}, {pipeline_mode = #tpu.pipeline_mode<synchronous>, transform_indices = @transform_1, window_bounds = array<i64: 4, 16>}, {pipeline_mode = #tpu.pipeline_mode<synchronous>, transform_indices = @transform_2, window_bounds = array<i64: 1, 16>}, {transform_indices = @transform_3, window_bounds = array<i64: 1>}, {pipeline_mode = #tpu.pipeline_mode<synchronous>, transform_indices = @transform_4, window_bounds = array<i64: 16, 4>}, {pipeline_mode = #tpu.pipeline_mode<synchronous>, transform_indices = @transform_5, window_bounds = array<i64: 1, 4>}, {transform_indices = @transform_6, window_bounds = array<i64: 2, 4, 256>}]} {
    %c0 = arith.constant 0 : index
    %c0_0 = arith.constant 0 : index
    %c0_1 = arith.constant 0 : index
    %0 = vector.load %arg1[%c0, %c0_0, %c0_1] : memref<2x4x256xf32, #tpu.memory_space<vmem>>, vector<2x4x256xf32>
    %cst = arith.constant dense<0.000000e+00> : vector<2x4xf32>
    %1 = vector.multi_reduction <add>, %0, %cst [2] : vector<2x4x256xf32> to vector<2x4xf32>
    %cst_2 = arith.constant 3.906250e-03 : f32
    %2 = vector.broadcast %cst_2 : f32 to vector<2x4xf32>
    %3 = arith.mulf %1, %2 : vector<2x4xf32>
    %c0_3 = arith.constant 0 : index
    %c0_4 = arith.constant 0 : index
    %4 = vector.load %arg2[%c0_3, %c0_4] : memref<4x16xf32, #tpu.memory_space<vmem>>, vector<4x16xf32>
    %cst_5 = arith.constant dense<0.000000e+00> : vector<2x16xf32>
    %5 = tpu.matmul %3, %4, %cst_5 {dimension_numbers = #tpu.dot_dimension_numbers<[1], [0], [0], [1], [0, 0, 1, 1], [], []>} : vector<2x4xf32>, vector<4x16xf32>, vector<2x16xf32> -> vector<2x16xf32>
    %c0_6 = arith.constant 0 : index
    %c0_7 = arith.constant 0 : index
    %6 = vector.load %arg3[%c0_6, %c0_7] : memref<1x16xf32, #tpu.memory_space<vmem>>, vector<1x16xf32>
    %7 = vector.broadcast %6 : vector<1x16xf32> to vector<2x16xf32>
    %8 = arith.addf %5, %7 : vector<2x16xf32>
    %c0_8 = arith.constant 0 : index
    %9 = memref.load %arg4[%c0_8] : memref<1xf32, #tpu.memory_space<smem>>
    %cst_9 = arith.constant 0.000000e+00 : f32
    %10 = vector.broadcast %cst_9 : f32 to vector<2x16xf32>
    %11 = arith.cmpf ogt, %8, %10 : vector<2x16xf32>
    %12 = vector.broadcast %9 : f32 to vector<2x16xf32>
    %13 = arith.mulf %12, %8 : vector<2x16xf32>
    %14 = arith.select %11, %8, %13 : vector<2x16xi1>, vector<2x16xf32>
    %c0_10 = arith.constant 0 : index
    %c0_11 = arith.constant 0 : index
    %15 = vector.load %arg5[%c0_10, %c0_11] : memref<16x4xf32, #tpu.memory_space<vmem>>, vector<16x4xf32>
    %cst_12 = arith.constant dense<0.000000e+00> : vector<2x4xf32>
    %16 = tpu.matmul %14, %15, %cst_12 {dimension_numbers = #tpu.dot_dimension_numbers<[1], [0], [0], [1], [0, 0, 1, 1], [], []>} : vector<2x16xf32>, vector<16x4xf32>, vector<2x4xf32> -> vector<2x4xf32>
    %c0_13 = arith.constant 0 : index
    %c0_14 = arith.constant 0 : index
    %17 = vector.load %arg6[%c0_13, %c0_14] : memref<1x4xf32, #tpu.memory_space<vmem>>, vector<1x4xf32>
    %18 = vector.broadcast %17 : vector<1x4xf32> to vector<2x4xf32>
    %19 = arith.addf %16, %18 : vector<2x4xf32>
    %20 = arith.negf %19 : vector<2x4xf32>
    %21 = math.exp %20 : vector<2x4xf32>
    %cst_15 = arith.constant 1.000000e+00 : f32
    %22 = vector.broadcast %cst_15 : f32 to vector<2x4xf32>
    %23 = arith.addf %22, %21 : vector<2x4xf32>
    %24 = arith.divf %22, %23 : vector<2x4xf32>
    %25 = vector.shape_cast %24 : vector<2x4xf32> to vector<2x4x1xf32>
    %26 = vector.broadcast %25 : vector<2x4x1xf32> to vector<2x4x256xf32>
    %27 = arith.mulf %0, %26 : vector<2x4x256xf32>
    %c0_16 = arith.constant 0 : index
    %c0_17 = arith.constant 0 : index
    %c0_18 = arith.constant 0 : index
    %28 = vector.load %arg7[%c0_16, %c0_17, %c0_18] : memref<2x4x256xf32, #tpu.memory_space<vmem>>, vector<2x4x256xf32>
    tpu.vector_store %arg7[%c0_16, %c0_17, %c0_18], %27 {strides = array<i32>} : memref<2x4x256xf32, #tpu.memory_space<vmem>>, vector<2x4x256xf32>,
    return
  }
  func.func @transform_0(%arg0: i32) -> (i32, i32, i32) {
    %c0_i32 = arith.constant 0 : i32
    %c0_i32_0 = arith.constant 0 : i32
    %c0_i32_1 = arith.constant 0 : i32
    return %arg0, %c0_i32, %c0_i32_0 : i32, i32, i32
  }
  func.func @transform_1(%arg0: i32) -> (i32, i32) {
    %c0_i32 = arith.constant 0 : i32
    %c0_i32_0 = arith.constant 0 : i32
    %c0_i32_1 = arith.constant 0 : i32
    return %c0_i32, %c0_i32_0 : i32, i32
  }
  func.func @transform_2(%arg0: i32) -> (i32, i32) {
    %c0_i32 = arith.constant 0 : i32
    %c0_i32_0 = arith.constant 0 : i32
    %c0_i32_1 = arith.constant 0 : i32
    return %c0_i32, %c0_i32_0 : i32, i32
  }
  func.func @transform_3(%arg0: i32) -> i32 {
    %c0_i32 = arith.constant 0 : i32
    %c0_i32_0 = arith.constant 0 : i32
    return %c0_i32 : i32
  }
  func.func @transform_4(%arg0: i32) -> (i32, i32) {
    %c0_i32 = arith.constant 0 : i32
    %c0_i32_0 = arith.constant 0 : i32
    %c0_i32_1 = arith.constant 0 : i32
    return %c0_i32, %c0_i32_0 : i32, i32
  }
  func.func @transform_5(%arg0: i32) -> (i32, i32) {
    %c0_i32 = arith.constant 0 : i32
    %c0_i32_0 = arith.constant 0 : i32
    %c0_i32_1 = arith.constant 0 : i32
    return %c0_i32, %c0_i32_0 : i32, i32
  }
  func.func @transform_6(%arg0: i32) -> (i32, i32, i32) {
    %c0_i32 = arith.constant 0 : i32
    %c0_i32_0 = arith.constant 0 : i32
    %c0_i32_1 = arith.constant 0 : i32
    return %arg0, %c0_i32, %c0_i32_0 : i32, i32, i32
  }
}

</mosaic_0001>

<bundles_post_ra>
// kernel: tpu_custom_call.1
= control target key start
LH: loop header
LB: loop body
LE: loop exit
PB: predicated region body
PF: predicated region fallthrough
CT: control target
= control target key end

     0   :  { %12 = vsyncpa [#allocation4], 0  ;;  %s353_s0 = inlined_call_operand.vmem [shape: f32[2,4,256], index: 0, kind: input, shape index: {}]   ;;  %s354_s1 = inlined_call_operand.vmem [shape: f32[4,16], index: 1, kind: input, shape index: {}]   ;;  %s355_s2 = inlined_call_operand.hbm [shape: f32[1,16], index: 2, kind: input, shape index: {}]   ;;  %s356_s3 = inlined_call_operand.<no memory space> [shape: f32[1], index: 3, kind: input, shape index: {}]   ;;  %s357_s4 = inlined_call_operand.vmem [shape: f32[16,4], index: 4, kind: input, shape index: {}]   ;;  %s358_s5 = inlined_call_operand.vmem [shape: f32[1,4], index: 5, kind: input, shape index: {}]   ;;  %s359_s6 = inlined_call_operand.hbm [shape: f32[2,4,256], index: 6, kind: output, shape index: {}]  }
   0x1   :  { %13 = vsyncpa [#allocation5], 0  ;;  %s23_s23 = sshll.u32 %s355_s2, 4  ;;  %s278_s24 = smov [#allocation3]   ;;  %s24_s23 = int_to_ptr.hbm [resolvable:$true] %s23_s23 }
   0x2   :  { %s25_s25 = sshll.u32 %s278_s24, 4  ;;  %s26_s25 = int_to_ptr.vmem [resolvable:$true] %s25_s25 }
   0x3   :  { %28 = dma.hbm_to_vmem [thread:$0]  %s24_s23, 16, %s26_s25, [#allocation4]  }
   0x4   :  { %274 = dma.done.wait [#allocation4], 16  }
   0x5   :  { %275 = vsyncadd [#allocation4], 4294967280  ;;  %v324_v0 = vld [vmem:[%s353_s0] sm:$0xff]  ;;  %v329_v1 = vld [vmem:[%s353_s0 + $0x8] sm:$0xff]  ;;  %vm54_vm0 = vcmask 1043456   ;;  %v74_v14 = vlaneseq  ;;  %vm78_vm1 = vcmask 1041409   ;;  %v108_v26 = vstv %s356_s3 }
   0x6   :  { %43 = vst [vmem:[#allocation1] ss:$2 sm:$0xff] %v324_v0  ;;  %v67_v12 = vld [vmem:[%s354_s1] sm:$0xf]  ;;  %vm80_vm2 = vcmask 31744   ;;  %v112_v22 = vld [vmem:[%s357_s4 + $0x8] sm:$0xff] }
   0x7   :  { %47 = vst [vmem:[#allocation1 + $0x10] ss:$2 sm:$0xff] %v329_v1  ;;  %209 = vmatpush.msk.msra.mxu0 %vm54_vm0, %v67_v12  ;;  %v75_v15 = vand.u32 127, %v74_v14  ;;  %135 = vmatpush.msra.mxu1 %v112_v22  ;;  %v111_v23 = vld [vmem:[%s357_s4] sm:$0xff]  ;;  %v220_v24 = vld [vmem:[#allocation3] ss:$0 sm:$0xff] }
   0x8   :  { %vm117_vm4 = vcmask 130048   ;;  %v162_v30 = vshrl.u32 %v74_v14, 7  ;;  %v221_v31 = vld [vmem:[%s358_s5] ss:$0 sm:$0xff]  ;;  %v279_v49 = vmov 839922192  }
   0x9   :  { %136 = vmatpush.msra.mxu1 %v111_v23  ;;  %v177_v50 = vunpack.c.l.s4 %v279_v49  ;;  %s280_s3 = smov [#allocation6]   ;;  %s196_s14 = sshll.u32 %s359_s6, 4  ;;  %s197_s14 = int_to_ptr.hbm [resolvable:$true] %s196_s14 }
   0xa   :  { %218 = vset.pattern.permute.xlu1 %v162_v30  ;;  %219 = vset.pattern.permute.xlu0 %v162_v30  ;;  %s194_s4 = sshll.u32 %s280_s3, 4  ;;  %s281_s15 = smov 128   ;;  %s195_s4 = int_to_ptr.vmem [resolvable:$true] %s194_s4 }
   0xb   :  { %v178_v51 = vunpack.c.0.s8 %v177_v50  ;;  %s282_s16 = smov 8  }
   0xd   :  { %v44_v2 = vld.sshfl [vmem:[#allocation1] sm:$0xff pattern:$0x75316420]  ;;  %v45_v3 = vld.sshfl [vmem:[#allocation1 + $0x8] sm:$0xff pattern:$0x75316420] }
   0xe   :  { %v55_v4 = vsel %vm54_vm0, %v44_v2, 0.0  ;;  %v56_v5 = vsel %vm54_vm0, %v45_v3, 0.0  ;;  %v48_v7 = vld.sshfl [vmem:[#allocation1 + $0x10] sm:$0xff pattern:$0x75316420] }
   0xf   :  { %v57_v6 = vadd.f32 %v56_v5, %v55_v4  ;;  %v49_v8 = vld.sshfl [vmem:[#allocation1 + $0x18] sm:$0xff pattern:$0x75316420]  ;;  %v60_v9 = vsel %vm54_vm0, %v48_v7, 0.0 }
  0x10   :  { %v61_v10 = vsel %vm54_vm0, %v49_v8, 0.0 }
  0x11   :  { %58 = vadd.xlane.f32.xlu0 %v57_v6  ;;  %v62_v11 = vadd.f32 %v61_v10, %v60_v9 }
  0x19   :  { %63 = vadd.xlane.f32.xlu0 %v62_v11 }
  0x84   :  { %v59_v13 = vpop.xlane.xlu0 %58 }
  0x85   :  { %v65_v16 = vmul.f32 0.00390625, %v59_v13 }
  0x87   :  { %v76_v19 = vperm.slane %v65_v16, %v75_v15 }
  0x8c   :  { %v64_v17 = vpop.xlane.xlu0 %63 }
  0x8d   :  { %v66_v18 = vmul.f32 0.00390625, %v64_v17 }
  0x8f   :  { %v77_v20 = vperm.slane %v66_v18, %v75_v15 }
  0x91   :  { %v79_v21 = vsel %vm78_vm1, %v77_v20, %v76_v19 }
  0x92   :  { %210 = vmatmul.msk.f32.vlgmr.msra.gmra.mxu0 %vm80_vm2, %v79_v21 }
 0x10f   :  { %v103_v25 = vpop.f32.mrf.mxu0 }
 0x110   :  { %v104_v27 = vadd.f32 %v220_v24, %v103_v25 }
 0x112   :  { %v109_v28 = vmul.f32 %v108_v26, %v104_v27  ;;  %vm107_vm3 = vcmp.gt.f32.partialorder %v104_v27, 0.0 }
 0x114   :  { %v110_v29 = vsel %vm107_vm3, %v104_v27, %v109_v28 }
 0x115   :  { %211 = vmatmul.msk.f32.vlgmr.msra.gmra.mxu1 %vm117_vm4, %v110_v29 }
 0x192   :  { %v138_v32 = vpop.f32.mrf.mxu1 }
 0x193   :  { %v139_v33 = vadd.f32 %v221_v31, %v138_v32 }
 0x195   :  { %v212_v34 = vmul.f32 -1.442695, %v139_v33 }
 0x197   :  { %222 = vpow2.f32 %v212_v34 }
 0x19d   :  { %v223_v35 = vpop.eup %222 }
 0x19e   :  { %v144_v36 = vadd.f32 1.0, %v223_v35 }
 0x1a0   :  { %224 = vrcp.f32 %v144_v36  ;;  %v156_v40 = vand.u32 2147483648, %v144_v36  ;;  %v154_v42 = vand.u32 2147483647, %v144_v36  ;;  %vm150_vm6 = vweird.f32 %v144_v36 }
 0x1a2   :  { %v157_v44 = vor.u32 1.1754944e-38, %v156_v40  ;;  %vm155_vm8 = vcmp.eq.f32.partialorder %v154_v42, 8.507059e+37 }
 0x1a6   :  { %v225_v37 = vpop.eup %224 }
 0x1a7   :  { %v146_v38 = vmul.f32 %v225_v37, %v144_v36  ;;  %vm151_vm5 = vweird.f32 %v225_v37 }
 0x1a8   :  { %vm152_vm7 = vmor %vm150_vm6, %vm151_vm5 }
 0x1a9   :  { %v147_v39 = vsub.f32 1.0, %v146_v38 }
 0x1ab   :  { %v148_v41 = vmul.f32 %v225_v37, %v147_v39 }
 0x1ad   :  { %v149_v43 = vadd.f32 %v225_v37, %v148_v41 }
 0x1af   :  { %v153_v45 = vsel %vm152_vm7, %v225_v37, %v149_v43 }
 0x1b0   :  { %v158_v46 = vsel %vm155_vm8, %v157_v44, %v153_v45 }
 0x1b1   :  { %v160_v47 = vperm.slane %v158_v46, 0  ;;  %v167_v48 = vperm.slane %v158_v46, 1 }
 0x1b3   :  { %165 = vperm.xlu1 %218, %v160_v47  }
 0x1bb   :  { %172 = vperm.xlu1 %218, %v167_v48  }
 0x225   :  { %v166_v52 = vpop.permute.xlu1 %165 }
 0x226   :  { %v179_v53 = vperm.slane %v166_v52, %v178_v51 }
 0x228   :  { %v186_v54 = vmul.f32 %v179_v53, %v324_v0 }
 0x22a   :  { %188 = vst [vmem:[#allocation6] sm:$0xff] %v186_v54 }
 0x22d   :  { %v173_v55 = vpop.permute.xlu1 %172 }
 0x22e   :  { %v183_v56 = vperm.slane %v173_v55, %v178_v51 }
 0x230   :  { %v187_v57 = vmul.f32 %v183_v56, %v329_v1 }
 0x232   :  { %189 = vst [vmem:[#allocation6 + $0x8] sm:$0xff] %v187_v57 }
 0x233   :  { %202 = dma.vmem_to_hbm [thread:$0]  %s195_s4, 256, %s197_s14, [#allocation5], %s281_s15, %s281_s15, %s282_s16  }
 0x234   :  { %276 = dma.done.wait [#allocation5], 256  }
 0x235   :  { %277 = vsyncadd [#allocation5], 4294967040 }
 0x236   :  { %207 = vsyncpa [#allocation4], 1 }
 0x237   :  { %208 = vsyncpa [#allocation5], 1 }

</bundles_post_ra>
